<compile_context>
chip_gen: v6e
topology: v6e:2x2x1
jax: 0.10.0
libtpu: 0.0.40
codegen_flags: <defaults>
</compile_context>

<pallas_src>
import functools
import numpy as np

import jax
import jax.numpy as jnp
from jax import lax
from jax.experimental import pallas as pl
from jax.experimental.pallas import tpu as pltpu


_LANE = 128


# ----------------------------------------------------------------------------
# mask helper (ported verbatim from the PyTorch module, host-side numpy)
# ----------------------------------------------------------------------------
def _make_span_from_seeds(seeds, span, total=None):
    inds = []
    for seed in seeds:
        for i in range(seed, seed + span):
            if total is not None and i >= total:
                break
            elif i not in inds:
                inds.append(int(i))
    return np.array(inds)


# ----------------------------------------------------------------------------
# Fused Pallas kernel: one grid step for the whole forward
# ----------------------------------------------------------------------------
def _fused_w2v_kernel(x_ref, enc_w_ref, enc_b_ref, ctx_w_ref, ctx_b_ref,
                      tok_ref, out_ref, *, temp, batch, seq, feat,
                      masked_rows, detect_negative_in_target):
    """encoder matmul -> mask blend -> context matmul -> cosine logits.

    Packed output layout per flattened row r = b*seq + l (width = 128 lanes):
      [0:feat]             z_r                       (encoder features)
      [feat:feat+1]        cos(z_r, c_r) / temp      (positive logit)
      [feat+1:feat+1+seq]  cos(z_r, z_{b,j}) / temp  (same-batch negatives table)
      [feat+1+seq:]        zero padding
    """
    inv_temp = jnp.float32(1.0 / temp)
    eps2 = jnp.float32(1e-8) * jnp.float32(1e-8)   # torch cosine_similarity eps, squared
    bl = batch * seq

    # ---- encoder: strided conv expressed as one flattened MXU matmul --------
    z = jnp.dot(x_ref[...], enc_w_ref[...],
                preferred_element_type=jnp.float32) + enc_b_ref[...]      # (BL, F)

    # ---- mask-token substitution (eval-mode mask is a trace-time constant) --
    row = lax.broadcasted_iota(jnp.int32, (bl, 1), 0)
    is_masked = jnp.zeros((bl, 1), jnp.bool_)
    for r in masked_rows:                                  # few static compares
        is_masked = jnp.logical_or(is_masked, row == r)
    tok = jnp.broadcast_to(tok_ref[...], z.shape)
    z_in = jnp.where(jnp.broadcast_to(is_masked, z.shape), tok, z)

    # ---- context_fn: per-position linear -------------------------------------
    # TODO(synk): the start-token row of the context output is dropped by
    # _calculate_similarity (c[..., 1:]) and context_fn here is per-position
    # linear, so that row is never computed (output-equivalent).
    c = jnp.dot(z_in, ctx_w_ref[...],
                preferred_element_type=jnp.float32) + ctx_b_ref[...]      # (BL, F)

    # ---- norms (once per unique row) + positive logits ------------------------
    z_nsq = jnp.sum(z * z, axis=-1, keepdims=True)                        # (BL, 1)
    c_nsq = jnp.sum(c * c, axis=-1, keepdims=True)                        # (BL, 1)
    pos = (jnp.sum(z * c, axis=-1, keepdims=True)
           * lax.rsqrt(jnp.maximum(z_nsq * c_nsq, eps2))                  # EUP, exact
           * inv_temp)                                                    # (BL, 1)

    # ---- negatives table: Gram of row-normalized encoder rows on the MXU -----
    # Per-row eps clamp (vs torch's clamp of the norm *product*); differs only
    # when a row norm is < 1e-8.
    zn = z * lax.rsqrt(jnp.maximum(z_nsq, eps2))                          # (BL, F)
    nt = (((1,), (1,)), ((), ()))              # contract feature axis: A @ B^T
    cos_blocks = []
    for b in range(batch):                     # static loop, B is tiny
        lo, hi = b * seq, (b + 1) * seq
        zn_b = zn[lo:hi, :]
        cos_b = lax.dot_general(zn_b, zn_b, nt,
                                preferred_element_type=jnp.float32) * inv_temp
        if detect_negative_in_target and b > 0:
            # TODO(synk): torch's `logits[1:][negative_in_target] = -inf` path is
            # ill-shaped and only triggers on exact float equality (effectively
            # dead); replicated for batches > 0 with an MXU squared-distance
            # test, which may differ from elementwise equality by rounding.
            z_b, c_b = z[lo:hi, :], c[lo:hi, :]
            cz = lax.dot_general(c_b, z_b, nt, preferred_element_type=jnp.float32)
            nsq_row = lax.dot_general(jnp.ones((seq, 1), jnp.float32),
                                      z_nsq[lo:hi, :], nt,
                                      preferred_element_type=jnp.float32)  # [i,j]=||z_j||^2
            dist2 = c_nsq[lo:hi, :] + nsq_row - 2.0 * cz
            cos_b = jnp.where(dist2 <= 0.0, -jnp.inf, cos_b)
        cos_blocks.append(cos_b)
    cos_rows = jnp.concatenate(cos_blocks, axis=0)                        # (BL, L)

    # ---- single lane-dense store ----------------------------------------------
    pieces = [z, pos, cos_rows]
    pad_w = out_ref.shape[-1] - (feat + 1 + seq)
    if pad_w > 0:
        pieces.append(jnp.zeros((bl, pad_w), jnp.float32))
    out_ref[...] = jnp.concatenate(pieces, axis=-1)                       # (BL, 128)


def _fused_forward(x_r, enc_w, enc_b, ctx_w, ctx_b, mask_tok, *,
                   temp, batch, seq, masked_rows,
                   detect_negative_in_target=False):
    """x_r: (B*L, K) pre-unfolded encoder input; returns packed (B*L, 128) slab."""
    bl, k = x_r.shape
    feat = enc_w.shape[1]
    packed_w = max(_LANE, ((feat + 1 + seq + _LANE - 1) // _LANE) * _LANE)
    kernel = functools.partial(
        _fused_w2v_kernel, temp=float(temp), batch=batch, seq=seq, feat=feat,
        masked_rows=tuple(int(r) for r in masked_rows),
        detect_negative_in_target=detect_negative_in_target)
    return pl.pallas_call(
        kernel,
        out_shape=jax.ShapeDtypeStruct((bl, packed_w), jnp.float32),
        grid=(1,),                                            # single fused step
        in_specs=[
            pl.BlockSpec((bl, k), lambda i: (0, 0)),          # x rows (flattened)
            pl.BlockSpec((k, feat), lambda i: (0, 0)),        # enc_w
            pl.BlockSpec((1, feat), lambda i: (0, 0)),        # enc_b
            pl.BlockSpec((feat, feat), lambda i: (0, 0)),     # ctx_w
            pl.BlockSpec((1, feat), lambda i: (0, 0)),        # ctx_b
            pl.BlockSpec((1, feat), lambda i: (0, 0)),        # mask token
        ],
        out_specs=pl.BlockSpec((bl, packed_w), lambda i: (0, 0)),
        compiler_params=pltpu.CompilerParams(
            dimension_semantics=("arbitrary",)),
    )(x_r, enc_w, enc_b, ctx_w, ctx_b, mask_tok)


# ----------------------------------------------------------------------------
# Model (synthetic encoder / context_fn with deterministic parameters)
# ----------------------------------------------------------------------------
class BendingCollegeWav2VecPallas:
    def __init__(self, key, in_channels=4, feat=32, downsample=6,
                 mask_rate=0.1, mask_span=6, temp=0.5, num_negatives=20):
        self.in_channels = in_channels
        self.feat = feat
        self.downsample = downsample
        self.mask_rate = mask_rate
        self.mask_span = mask_span
        self.temp = temp
        self.num_negatives = num_negatives

        k1, k2, k3, k4, k5 = jax.random.split(key, 5)
        # "encoder": strided Conv1d(C -> F, kernel=stride=downsample) == matmul
        self.enc_w = 0.1 * jax.random.normal(
            k1, (in_channels * downsample, feat), jnp.float32)
        self.enc_b = jnp.zeros((1, feat), jnp.float32)
        # "context_fn": mask-token substitution + per-position linear
        self.ctx_w = 0.1 * jax.random.normal(k2, (feat, feat), jnp.float32)
        self.ctx_b = jnp.zeros((1, feat), jnp.float32)
        self.mask_token = jax.random.normal(k3, (1, feat), jnp.float32)
        # kept for interface fidelity; its context row is dropped before similarity
        self.start_token = jax.random.normal(k4, (1, feat), jnp.float32)
        self.neg_key = k5

        self._forward_jit = jax.jit(self._forward)

    def _eval_mask(self, batch_size, samples):
        # eval-mode branch of forward() (deterministic mask), host-side numpy
        half_avg_num_seeds = max(1, int(samples * self.mask_rate * 0.5))
        if samples <= self.mask_span * half_avg_num_seeds:
            raise ValueError("Masking the entire span, pointless.")
        seeds = (samples // half_avg_num_seeds
                 * np.arange(half_avg_num_seeds).astype(int))
        mask = np.zeros((batch_size, samples), dtype=bool)
        mask[:, _make_span_from_seeds(seeds, self.mask_span)] = True
        return mask

    def _forward(self, x, neg_key):
        # x: (B, C, T)  (PyTorch NCL conv-1d layout)
        B, C, T = x.shape
        ds, F, N = self.downsample, self.feat, self.num_negatives
        L = T // ds
        K = C * ds

        # unfold the strided conv into flattened rows (pure layout, fused under jit)
        x_r = (x[:, :, :L * ds]
               .reshape(B, C, L, ds)
               .transpose(0, 2, 1, 3)
               .reshape(B * L, K))

        # deterministic eval-mode mask, trace-time constant -> baked into kernel
        mask_np = self._eval_mask(B, L)                          # (B, L) bool
        masked_rows = np.nonzero(mask_np.reshape(-1))[0]         # flattened indices

        # ---- the single fused Pallas kernel ---------------------------------
        packed = _fused_forward(
            x_r, self.enc_w, self.enc_b, self.ctx_w, self.ctx_b,
            self.mask_token, temp=self.temp, batch=B, seq=L,
            masked_rows=masked_rows)

        z_blf = packed[:, :F].reshape(B, L, F)
        z = jnp.transpose(z_blf, (0, 2, 1))                      # (B, F, L) torch layout
        cos_pos = packed[:, F:F + 1].reshape(B, L, 1)
        cos_all = packed[:, F + 1:F + 1 + L].reshape(B, L, L)

        # ---- _generate_negatives + column pick -------------------------------
        # Negatives are same-batch rows of z with indices drawn from [0, L-2]
        # (matches torch.randint(0, full_len-1); no self-exclusion in the
        # reference). The feature contraction already happened on the MXU, so
        # this is a tiny index gather on the (B, L, L) cosine table.
        neg_inds = jax.random.randint(neg_key, (B, L, N), 0, L - 1, jnp.int32)
        cos_neg = jnp.take_along_axis(cos_all, neg_inds, axis=2)  # (B, L, N)

        logits = jnp.concatenate([cos_pos, cos_neg], axis=-1)     # (B, L, N+1)
        return logits.reshape(-1, N + 1), z, jnp.asarray(mask_np)

    def forward(self, x):
        # fresh negatives every call, like torch's per-call randint
        self.neg_key, use_key = jax.random.split(self.neg_key)
        return self._forward_jit(x, use_key)


# ----------------------------------------------------------------------------
if __name__ == "__main__":
    key = jax.random.PRNGKey(0)
    k_param, k_x = jax.random.split(key)

    B, C, T = 2, 4, 96
    model = BendingCollegeWav2VecPallas(
        k_param, in_channels=C, feat=32, downsample=6,
        mask_rate=0.1, mask_span=6, temp=0.5, num_negatives=20)

    x = jax.random.normal(k_x, (B, C, T), jnp.float32)

    logits, z, mask = model.forward(x)
    jax.block_until_ready((logits, z, mask))

    L = T // 6
    assert logits.shape == (B * L, 20 + 1)
    assert z.shape == (B, 32, L)
    assert mask.shape == (B, L)
    assert bool(jnp.all(jnp.isfinite(logits)))
    print("KERNEL_OK")
</pallas_src>

<mosaic_0001>
module attributes {stable_mosaic.version = 11 : i64} {
  func.func @_fused_w2v_kernel(%arg0: i32, %arg1: memref<32x24xf32, #tpu.memory_space<vmem>>, %arg2: memref<24x32xf32, #tpu.memory_space<vmem>>, %arg3: memref<1x32xf32, #tpu.memory_space<vmem>>, %arg4: memref<32x32xf32, #tpu.memory_space<vmem>>, %arg5: memref<1x32xf32, #tpu.memory_space<vmem>>, %arg6: memref<1x32xf32, #tpu.memory_space<vmem>>, %arg7: memref<32x128xf32, #tpu.memory_space<vmem>>) attributes {dimension_semantics = [#tpu.dimension_semantics<arbitrary>], iteration_bounds = array<i64: 1>, scalar_prefetch = 0 : i64, scratch_operands = 0 : i64, tpu.core_type = #tpu.core_type<tc>, window_params = [{pipeline_mode = #tpu.pipeline_mode<synchronous>, transform_indices = @transform_0, window_bounds = array<i64: 32, 24>}, {pipeline_mode = #tpu.pipeline_mode<synchronous>, transform_indices = @transform_1, window_bounds = array<i64: 24, 32>}, {pipeline_mode = #tpu.pipeline_mode<synchronous>, transform_indices = @transform_2, window_bounds = array<i64: 1, 32>}, {pipeline_mode = #tpu.pipeline_mode<synchronous>, transform_indices = @transform_3, window_bounds = array<i64: 32, 32>}, {pipeline_mode = #tpu.pipeline_mode<synchronous>, transform_indices = @transform_4, window_bounds = array<i64: 1, 32>}, {pipeline_mode = #tpu.pipeline_mode<synchronous>, transform_indices = @transform_5, window_bounds = array<i64: 1, 32>}, {pipeline_mode = #tpu.pipeline_mode<synchronous>, transform_indices = @transform_6, window_bounds = array<i64: 32, 128>}]} {
    %cst = arith.constant 9.99999993E-9 : f32
    %cst_0 = arith.constant 9.99999993E-9 : f32
    %0 = arith.mulf %cst, %cst_0 : f32
    %c0 = arith.constant 0 : index
    %c0_1 = arith.constant 0 : index
    %1 = vector.load %arg1[%c0, %c0_1] : memref<32x24xf32, #tpu.memory_space<vmem>>, vector<32x24xf32>
    %c0_2 = arith.constant 0 : index
    %c0_3 = arith.constant 0 : index
    %2 = vector.load %arg2[%c0_2, %c0_3] : memref<24x32xf32, #tpu.memory_space<vmem>>, vector<24x32xf32>
    %cst_4 = arith.constant dense<0.000000e+00> : vector<32x32xf32>
    %3 = tpu.matmul %1, %2, %cst_4 {dimension_numbers = #tpu.dot_dimension_numbers<[1], [0], [0], [1], [0, 0, 1, 1], [], []>} : vector<32x24xf32>, vector<24x32xf32>, vector<32x32xf32> -> vector<32x32xf32>
    %c0_5 = arith.constant 0 : index
    %c0_6 = arith.constant 0 : index
    %4 = vector.load %arg3[%c0_5, %c0_6] : memref<1x32xf32, #tpu.memory_space<vmem>>, vector<1x32xf32>
    %5 = vector.broadcast %4 : vector<1x32xf32> to vector<32x32xf32>
    %6 = arith.addf %3, %5 : vector<32x32xf32>
    %7 = tpu.iota {dimensions = array<i32: 0>} : vector<32x1xi32>
    %false = arith.constant false
    %8 = vector.broadcast %false : i1 to vector<32x1xi1>
    %c0_i32 = arith.constant 0 : i32
    %9 = vector.broadcast %c0_i32 : i32 to vector<32x1xi32>
    %10 = arith.cmpi eq, %7, %9 : vector<32x1xi32>
    %11 = arith.ori %8, %10 : vector<32x1xi1>
    %c1_i32 = arith.constant 1 : i32
    %12 = vector.broadcast %c1_i32 : i32 to vector<32x1xi32>
    %13 = arith.cmpi eq, %7, %12 : vector<32x1xi32>
    %14 = arith.ori %11, %13 : vector<32x1xi1>
    %c2_i32 = arith.constant 2 : i32
    %15 = vector.broadcast %c2_i32 : i32 to vector<32x1xi32>
    %16 = arith.cmpi eq, %7, %15 : vector<32x1xi32>
    %17 = arith.ori %14, %16 : vector<32x1xi1>
    %c3_i32 = arith.constant 3 : i32
    %18 = vector.broadcast %c3_i32 : i32 to vector<32x1xi32>
    %19 = arith.cmpi eq, %7, %18 : vector<32x1xi32>
    %20 = arith.ori %17, %19 : vector<32x1xi1>
    %c4_i32 = arith.constant 4 : i32
    %21 = vector.broadcast %c4_i32 : i32 to vector<32x1xi32>
    %22 = arith.cmpi eq, %7, %21 : vector<32x1xi32>
    %23 = arith.ori %20, %22 : vector<32x1xi1>
    %c5_i32 = arith.constant 5 : i32
    %24 = vector.broadcast %c5_i32 : i32 to vector<32x1xi32>
    %25 = arith.cmpi eq, %7, %24 : vector<32x1xi32>
    %26 = arith.ori %23, %25 : vector<32x1xi1>
    %c16_i32 = arith.constant 16 : i32
    %27 = vector.broadcast %c16_i32 : i32 to vector<32x1xi32>
    %28 = arith.cmpi eq, %7, %27 : vector<32x1xi32>
    %29 = arith.ori %26, %28 : vector<32x1xi1>
    %c17_i32 = arith.constant 17 : i32
    %30 = vector.broadcast %c17_i32 : i32 to vector<32x1xi32>
    %31 = arith.cmpi eq, %7, %30 : vector<32x1xi32>
    %32 = arith.ori %29, %31 : vector<32x1xi1>
    %c18_i32 = arith.constant 18 : i32
    %33 = vector.broadcast %c18_i32 : i32 to vector<32x1xi32>
    %34 = arith.cmpi eq, %7, %33 : vector<32x1xi32>
    %35 = arith.ori %32, %34 : vector<32x1xi1>
    %c19_i32 = arith.constant 19 : i32
    %36 = vector.broadcast %c19_i32 : i32 to vector<32x1xi32>
    %37 = arith.cmpi eq, %7, %36 : vector<32x1xi32>
    %38 = arith.ori %35, %37 : vector<32x1xi1>
    %c20_i32 = arith.constant 20 : i32
    %39 = vector.broadcast %c20_i32 : i32 to vector<32x1xi32>
    %40 = arith.cmpi eq, %7, %39 : vector<32x1xi32>
    %41 = arith.ori %38, %40 : vector<32x1xi1>
    %c21_i32 = arith.constant 21 : i32
    %42 = vector.broadcast %c21_i32 : i32 to vector<32x1xi32>
    %43 = arith.cmpi eq, %7, %42 : vector<32x1xi32>
    %44 = arith.ori %41, %43 : vector<32x1xi1>
    %c0_7 = arith.constant 0 : index
    %c0_8 = arith.constant 0 : index
    %45 = vector.load %arg6[%c0_7, %c0_8] : memref<1x32xf32, #tpu.memory_space<vmem>>, vector<1x32xf32>
    %46 = vector.shape_cast %45 : vector<1x32xf32> to vector<1x32xf32>
    %47 = vector.broadcast %46 : vector<1x32xf32> to vector<32x32xf32>
    %48 = vector.shape_cast %44 : vector<32x1xi1> to vector<32x1xi1>
    %49 = vector.broadcast %48 : vector<32x1xi1> to vector<32x32xi1>
    %50 = arith.select %49, %47, %6 : vector<32x32xi1>, vector<32x32xf32>
    %c0_9 = arith.constant 0 : index
    %c0_10 = arith.constant 0 : index
    %51 = vector.load %arg4[%c0_9, %c0_10] : memref<32x32xf32, #tpu.memory_space<vmem>>, vector<32x32xf32>
    %cst_11 = arith.constant dense<0.000000e+00> : vector<32x32xf32>
    %52 = tpu.matmul %50, %51, %cst_11 {dimension_numbers = #tpu.dot_dimension_numbers<[1], [0], [0], [1], [0, 0, 1, 1], [], []>} : vector<32x32xf32>, vector<32x32xf32>, vector<32x32xf32> -> vector<32x32xf32>
    %c0_12 = arith.constant 0 : index
    %c0_13 = arith.constant 0 : index
    %53 = vector.load %arg5[%c0_12, %c0_13] : memref<1x32xf32, #tpu.memory_space<vmem>>, vector<1x32xf32>
    %54 = vector.broadcast %53 : vector<1x32xf32> to vector<32x32xf32>
    %55 = arith.addf %52, %54 : vector<32x32xf32>
    %56 = arith.mulf %6, %6 : vector<32x32xf32>
    %cst_14 = arith.constant dense<0.000000e+00> : vector<32xf32>
    %57 = vector.multi_reduction <add>, %56, %cst_14 [1] : vector<32x32xf32> to vector<32xf32>
    %58 = vector.shape_cast %57 : vector<32xf32> to vector<32x1xf32>
    %59 = arith.mulf %55, %55 : vector<32x32xf32>
    %cst_15 = arith.constant dense<0.000000e+00> : vector<32xf32>
    %60 = vector.multi_reduction <add>, %59, %cst_15 [1] : vector<32x32xf32> to vector<32xf32>
    %61 = vector.shape_cast %60 : vector<32xf32> to vector<32x1xf32>
    %62 = arith.mulf %6, %55 : vector<32x32xf32>
    %cst_16 = arith.constant dense<0.000000e+00> : vector<32xf32>
    %63 = vector.multi_reduction <add>, %62, %cst_16 [1] : vector<32x32xf32> to vector<32xf32>
    %64 = vector.shape_cast %63 : vector<32xf32> to vector<32x1xf32>
    %65 = arith.mulf %58, %61 : vector<32x1xf32>
    %66 = vector.broadcast %0 : f32 to vector<32x1xf32>
    %67 = arith.maximumf %65, %66 : vector<32x1xf32>
    %68 = math.rsqrt %67 : vector<32x1xf32>
    %69 = arith.mulf %64, %68 : vector<32x1xf32>
    %cst_17 = arith.constant 2.000000e+00 : f32
    %70 = vector.broadcast %cst_17 : f32 to vector<32x1xf32>
    %71 = arith.mulf %69, %70 : vector<32x1xf32>
    %72 = vector.broadcast %0 : f32 to vector<32x1xf32>
    %73 = arith.maximumf %58, %72 : vector<32x1xf32>
    %74 = math.rsqrt %73 : vector<32x1xf32>
    %75 = vector.broadcast %74 : vector<32x1xf32> to vector<32x32xf32>
    %76 = arith.mulf %6, %75 : vector<32x32xf32>
    %77 = vector.extract_strided_slice %76 {offsets = [0, 0], sizes = [16, 32], strides = [1, 1]} : vector<32x32xf32> to vector<16x32xf32>
    %cst_18 = arith.constant dense<0.000000e+00> : vector<16x16xf32>
    %78 = tpu.matmul %77, %77, %cst_18 {dimension_numbers = #tpu.dot_dimension_numbers<[1], [1], [0], [0], [0, 0, 1, 0], [], []>} : vector<16x32xf32>, vector<16x32xf32>, vector<16x16xf32> -> vector<16x16xf32>
    %cst_19 = arith.constant 2.000000e+00 : f32
    %79 = vector.broadcast %cst_19 : f32 to vector<16x16xf32>
    %80 = arith.mulf %78, %79 : vector<16x16xf32>
    %81 = vector.extract_strided_slice %76 {offsets = [16, 0], sizes = [16, 32], strides = [1, 1]} : vector<32x32xf32> to vector<16x32xf32>
    %cst_20 = arith.constant dense<0.000000e+00> : vector<16x16xf32>
    %82 = tpu.matmul %81, %81, %cst_20 {dimension_numbers = #tpu.dot_dimension_numbers<[1], [1], [0], [0], [0, 0, 1, 0], [], []>} : vector<16x32xf32>, vector<16x32xf32>, vector<16x16xf32> -> vector<16x16xf32>
    %cst_21 = arith.constant 2.000000e+00 : f32
    %83 = vector.broadcast %cst_21 : f32 to vector<16x16xf32>
    %84 = arith.mulf %82, %83 : vector<16x16xf32>
    %85 = tpu.concatenate %80, %84 in 0 : vector<16x16xf32>, vector<16x16xf32> -> vector<32x16xf32>
    %cst_22 = arith.constant 0.000000e+00 : f32
    %86 = vector.broadcast %cst_22 : f32 to vector<32x79xf32>
    %87 = tpu.concatenate %6, %71, %85, %86 in 1 : vector<32x32xf32>, vector<32x1xf32>, vector<32x16xf32>, vector<32x79xf32> -> vector<32x128xf32>
    %c0_23 = arith.constant 0 : index
    %c0_24 = arith.constant 0 : index
    %88 = vector.load %arg7[%c0_23, %c0_24] : memref<32x128xf32, #tpu.memory_space<vmem>>, vector<32x128xf32>
    tpu.vector_store %arg7[%c0_23, %c0_24], %87 {strides = array<i32>} : memref<32x128xf32, #tpu.memory_space<vmem>>, vector<32x128xf32>,
    return
  }
  func.func @transform_0(%arg0: i32) -> (i32, i32) {
    %c0_i32 = arith.constant 0 : i32
    %c0_i32_0 = arith.constant 0 : i32
    %c0_i32_1 = arith.constant 0 : i32
    return %c0_i32, %c0_i32_0 : i32, i32
  }
  func.func @transform_1(%arg0: i32) -> (i32, i32) {
    %c0_i32 = arith.constant 0 : i32
    %c0_i32_0 = arith.constant 0 : i32
    %c0_i32_1 = arith.constant 0 : i32
    return %c0_i32, %c0_i32_0 : i32, i32
  }
  func.func @transform_2(%arg0: i32) -> (i32, i32) {
    %c0_i32 = arith.constant 0 : i32
    %c0_i32_0 = arith.constant 0 : i32
    %c0_i32_1 = arith.constant 0 : i32
    return %c0_i32, %c0_i32_0 : i32, i32
  }
  func.func @transform_3(%arg0: i32) -> (i32, i32) {
    %c0_i32 = arith.constant 0 : i32
    %c0_i32_0 = arith.constant 0 : i32
    %c0_i32_1 = arith.constant 0 : i32
    return %c0_i32, %c0_i32_0 : i32, i32
  }
  func.func @transform_4(%arg0: i32) -> (i32, i32) {
    %c0_i32 = arith.constant 0 : i32
    %c0_i32_0 = arith.constant 0 : i32
    %c0_i32_1 = arith.constant 0 : i32
    return %c0_i32, %c0_i32_0 : i32, i32
  }
  func.func @transform_5(%arg0: i32) -> (i32, i32) {
    %c0_i32 = arith.constant 0 : i32
    %c0_i32_0 = arith.constant 0 : i32
    %c0_i32_1 = arith.constant 0 : i32
    return %c0_i32, %c0_i32_0 : i32, i32
  }
  func.func @transform_6(%arg0: i32) -> (i32, i32) {
    %c0_i32 = arith.constant 0 : i32
    %c0_i32_0 = arith.constant 0 : i32
    %c0_i32_1 = arith.constant 0 : i32
    return %c0_i32, %c0_i32_0 : i32, i32
  }
}

</mosaic_0001>

<bundles_post_ra>
// kernel: _forward.1
= control target key start
LH: loop header
LB: loop body
LE: loop exit
PB: predicated region body
PF: predicated region fallthrough
CT: control target
= control target key end

     0   :  { %vm37_vm0 = vcmask 195584   ;;  %v135_v11 = vlaneseq  ;;  %v744_v15 = vmov 0   ;;  %s927_s1 = inlined_call_operand.vmem [shape: f32[24,32], index: 1, kind: input, shape index: {}]   ;;  %s928_s0 = inlined_call_operand.vmem [shape: f32[32,24], index: 0, kind: input, shape index: {}]   ;;  %s929_s3 = inlined_call_operand.vmem [shape: f32[32,32], index: 3, kind: input, shape index: {}]   ;;  %s930_s2 = inlined_call_operand.vmem [shape: f32[1,32], index: 2, kind: input, shape index: {}, may-alias: {2,4}]   ;;  %s931_s5 = inlined_call_operand.vmem [shape: f32[1,32], index: 5, kind: input, shape index: {}]   ;;  %s932_s4 = inlined_call_operand.vmem [shape: f32[1,32], index: 4, kind: input, shape index: {}, may-alias: {2,4}]   ;;  %s933_s6 = inlined_call_operand.vmem [shape: f32[32,128], index: 6, kind: output, shape index: {}]  }
   0x1   :  { %v29_v0 = vld [vmem:[%s927_s1 + $0x10] sm:$0xff]  ;;  %v28_v1 = vld [vmem:[%s927_s1 + $0x8] sm:$0xff]  ;;  %v23_v2 = vld [vmem:[%s928_s0] sm:$0xff] }
   0x2   :  { %686 = vmatprep.subr.mxu0 %v29_v0  ;;  %v27_v3 = vld [vmem:[%s927_s1] sm:$0xff]  ;;  %692 = vmatprep.mubr.msk.f32.mxu0 %vm37_vm0, %v23_v2  ;;  %v254_v4 = vld [vmem:[%s929_s3 + $0x18] sm:$0xff]  ;;  %v24_v5 = vld [vmem:[%s928_s0 + $0x8] sm:$0xff]  ;;  %v136_v12 = vshrl.u32 %v135_v11, 7 }
   0x3   :  { %687 = vmatpush3.msra.mxu0 %v29_v0  ;;  %698 = vmatprep.subr.mxu1 %v254_v4  ;;  %v25_v6 = vld [vmem:[%s928_s0 + $0x10] sm:$0xff]  ;;  %v26_v7 = vld [vmem:[%s928_s0 + $0x18] sm:$0xff]  ;;  %v252_v9 = vld [vmem:[%s929_s3 + $0x8] sm:$0xff] }
   0x4   :  { %688 = vmatprep.subr.mxu0 %v28_v1  ;;  %699 = vmatpush3.msra.mxu1 %v254_v4  ;;  %v253_v8 = vld [vmem:[%s929_s3 + $0x10] sm:$0xff]  ;;  %v251_v10 = vld [vmem:[%s929_s3] sm:$0xff]  ;;  %v138_v13 = vadd.s32 16, %v136_v12  ;;  %vm140_vm1 = vcmp.eq.s32.totalorder %v136_v12, 0  ;;  %vm144_vm2 = vcmp.eq.s32.totalorder %v136_v12, 1  ;;  %vm152_vm4 = vcmp.eq.s32.totalorder %v136_v12, 2 }
   0x5   :  { %689 = vmatpush3.msra.mxu0 %v28_v1  ;;  %700 = vmatprep.subr.mxu1 %v253_v8  ;;  %vm148_vm3 = vmor %vm140_vm1, %vm144_vm2  ;;  %vm160_vm8 = vcmp.eq.s32.totalorder %v136_v12, 3  ;;  %vm168_vm12 = vcmp.eq.s32.totalorder %v136_v12, 4  ;;  %v644_v14 = vld [vmem:[%s930_s2] ss:$0 sm:$0xff] }
   0x6   :  { %690 = vmatprep.subr.mxu0 %v27_v3  ;;  %701 = vmatpush3.msra.mxu1 %v253_v8  ;;  %vm186_vm5 = vcmp.eq.s32.totalorder %v138_v13, 16  ;;  %vm194_vm6 = vcmp.eq.s32.totalorder %v138_v13, 17  ;;  %vm156_vm7 = vmor %vm148_vm3, %vm152_vm4  ;;  %vm202_vm10 = vcmp.eq.s32.totalorder %v138_v13, 18  ;;  %vm210_vm14 = vcmp.eq.s32.totalorder %v138_v13, 19  ;;  %v649_v20 = vld [vmem:[%s931_s5] ss:$0 sm:$0xff] }
   0x7   :  { %691 = vmatpush3.msra.mxu0 %v27_v3  ;;  %702 = vmatprep.subr.mxu1 %v252_v9  ;;  %vm198_vm9 = vmor %vm186_vm5, %vm194_vm6  ;;  %vm218_vm2 = vcmp.eq.s32.totalorder %v138_v13, 20  ;;  %vm226_vm5 = vcmp.eq.s32.totalorder %v138_v13, 21  ;;  %v650_v53 = vld [vmem:[%s932_s4] ss:$0 sm:$0xff]  ;;  %s745_s4 = smov 33  }
   0x8   :  { %693 = vmatmul.mubr.msk.f32.vlgmr.msra.gmra.mxu0 %vm37_vm0, %v24_v5  ;;  %703 = vmatpush3.msra.mxu1 %v252_v9  ;;  %vm164_vm11 = vmor %vm156_vm7, %vm160_vm8  ;;  %vm262_vm7 = vcmask 261120  }
   0x9   :  { %695 = vmatprep.mubr.msk.f32.mxu0 %vm37_vm0, %v25_v6  ;;  %704 = vmatprep.subr.mxu1 %v251_v10  ;;  %vm206_vm13 = vmor %vm198_vm9, %vm202_vm10  ;;  %vm626_vm10 = vcmask 269312  }
   0xa   :  { %705 = vmatpush3.msra.mxu1 %v251_v10  ;;  %vm172_vm15 = vmor %vm164_vm11, %vm168_vm12  ;;  %vm631_vm11 = vcmask 400384  }
   0xb   :  { %vm214_vm1 = vmor %vm206_vm13, %vm210_vm14 }
   0xc   :  { %696 = vmatmul.mubr.msk.f32.gmra.mxu0 %vm37_vm0, %v26_v7  ;;  %vm176_vm0 = vcmp.eq.s32.totalorder %v136_v12, 5  ;;  %vm222_vm4 = vmor %vm214_vm1, %vm218_vm2 }
   0xd   :  { %vm180_vm3 = vmor %vm172_vm15, %vm176_vm0 }
   0xe   :  { %v239_v16 = vsel %vm180_vm3, 1, %v744_v15  ;;  %vm230_vm6 = vmor %vm222_vm4, %vm226_vm5 }
   0xf   :  { %vm243_vm8 = vcmp.eq.s32.totalorder %v239_v16, 1  ;;  %v241_v23 = vsel %vm230_vm6, 1, %v744_v15 }
  0x10   :  { %vm245_vm9 = vcmp.eq.s32.totalorder %v241_v23, 1 }
  0xc8   :  { %v694_v17 = vpop.f32.mrf.mxu0 }
  0xc9   :  { %v821_v18 = vadd.f32 %v694_v17, %v644_v14 }
  0xca   :  { %v116_v19 = vpop.f32.mrf.mxu0 }
  0xcb   :  { %v826_v21 = vadd.f32 %v644_v14, %v116_v19  ;;  %v361_v22 = vmul.f32 %v821_v18, %v821_v18 }
  0xcc   :  { %v697_v24 = vpop.f32.mrf.mxu0 }
  0xcd   :  { %v830_v25 = vadd.f32 %v697_v24, %v644_v14  ;;  %v367_v26 = vsel %vm262_vm7, %v361_v22, 0.0  ;;  %v247_v27 = vsel %vm243_vm8, %v649_v20, %v826_v21  ;;  %v360_v28 = vmul.f32 %v826_v21, %v826_v21 }
  0xce   :  { %368 = vadd.xlane.f32.xlu0 %v367_v26  ;;  %v126_v29 = vpop.f32.mrf.mxu0  ;;  %706 = vmatprep.mubr.msk.f32.mxu1 %vm262_vm7, %v247_v27 }
  0xcf   :  { %v837_v30 = vadd.f32 %v644_v14, %v126_v29  ;;  %707 = vmatmul.mubr.msk.f32.vlgmr.msra.gmra.mxu1 %vm262_vm7, %v821_v18  ;;  %v364_v31 = vsel %vm262_vm7, %v360_v28, 0.0  ;;  %v363_v32 = vmul.f32 %v830_v25, %v830_v25 }
  0xd0   :  { %365 = vadd.xlane.f32.xlu1 %v364_v31 }
  0xd1   :  { %v373_v33 = vsel %vm262_vm7, %v363_v32, 0.0  ;;  %v249_v34 = vsel %vm245_vm9, %v649_v20, %v837_v30  ;;  %v362_v35 = vmul.f32 %v837_v30, %v837_v30 }
  0xd2   :  { %374 = vadd.xlane.f32.xlu0 %v373_v33  ;;  %709 = vmatprep.mubr.msk.f32.mxu1 %vm262_vm7, %v249_v34 }
  0xd3   :  { %710 = vmatmul.mubr.msk.f32.gmra.mxu1 %vm262_vm7, %v830_v25  ;;  %v370_v36 = vsel %vm262_vm7, %v362_v35, 0.0 }
  0xd4   :  { %371 = vadd.xlane.f32.xlu1 %v370_v36 }
 0x157   :  { %v852_v37 = vpop.xlane.xlu0 %368 }
 0x158   :  { %v429_v38 = vmax.f32 %v852_v37, 1e-16 }
 0x159   :  { %v855_v39 = vpop.xlane.xlu1 %365 }
 0x15a   :  { %728 = vrsqrt.f32 %v429_v38  ;;  %v428_v40 = vmax.f32 %v855_v39, 1e-16 }
 0x15b   :  { %v858_v41 = vpop.xlane.xlu0 %374 }
 0x15c   :  { %730 = vrsqrt.f32 %v428_v40  ;;  %v431_v42 = vmax.f32 %v858_v41, 1e-16 }
 0x15d   :  { %v861_v43 = vpop.xlane.xlu1 %371 }
 0x15e   :  { %732 = vrsqrt.f32 %v431_v42  ;;  %v430_v44 = vmax.f32 %v861_v43, 1e-16 }
 0x160   :  { %734 = vrsqrt.f32 %v430_v44 }
 0x167   :  { %v729_v45 = vpop.eup %728 }
 0x168   :  { %v437_v46 = vmul.f32 %v729_v45, %v821_v18 }
 0x169   :  { %v731_v47 = vpop.eup %730 }
 0x16a   :  { %712 = vmatprep.subr.msk.mxu0 %vm262_vm7, %v437_v46  ;;  %v436_v48 = vmul.f32 %v731_v47, %v826_v21 }
 0x16b   :  { %v733_v49 = vpop.eup %732  ;;  %713 = vmatpush3.xpose.msk.msra.mxu0 %vm262_vm7, %v437_v46 }
 0x16c   :  { %714 = vmatprep.subr.msk.mxu0 %vm262_vm7, %v436_v48  ;;  %716 = vmatprep.mubr.msk.f32.mxu0 %vm262_vm7, %v436_v48  ;;  %v439_v50 = vmul.f32 %v733_v49, %v830_v25 }
 0x16d   :  { %v735_v51 = vpop.eup %734 }
 0x16e   :  { %719 = vmatprep.subr.msk.mxu1 %vm262_vm7, %v439_v50  ;;  %v438_v52 = vmul.f32 %v735_v51, %v837_v30 }
 0x16f   :  { %715 = vmatpush3.xpose.msk.msra.mxu0 %vm262_vm7, %v436_v48  ;;  %720 = vmatpush3.xpose.msk.msra.mxu1 %vm262_vm7, %v439_v50 }
 0x170   :  { %721 = vmatprep.subr.msk.mxu1 %vm262_vm7, %v438_v52  ;;  %723 = vmatprep.mubr.msk.f32.mxu1 %vm262_vm7, %v438_v52 }
 0x172   :  { %717 = vmatmul.mubr.msk.f32.vlgmr.msra.gmra.mxu0 %vm262_vm7, %v437_v46 }
 0x173   :  { %722 = vmatpush3.xpose.msk.msra.mxu1 %vm262_vm7, %v438_v52 }
 0x176   :  { %724 = vmatmul.mubr.msk.f32.vlgmr.msra.gmra.mxu1 %vm262_vm7, %v439_v50 }
 0x18f   :  { %v708_v54 = vpop.f32.mrf.mxu1 }
 0x190   :  { %v347_v55 = vadd.f32 %v708_v54, %v650_v53 }
 0x191   :  { %v341_v56 = vpop.f32.mrf.mxu1 }
 0x192   :  { %v342_v57 = vadd.f32 %v650_v53, %v341_v56  ;;  %v377_v58 = vmul.f32 %v347_v55, %v347_v55  ;;  %v393_v63 = vmul.f32 %v347_v55, %v821_v18 }
 0x193   :  { %v711_v59 = vpop.f32.mrf.mxu1 }
 0x194   :  { %v357_v60 = vadd.f32 %v711_v59, %v650_v53  ;;  %v383_v61 = vsel %vm262_vm7, %v377_v58, 0.0  ;;  %v376_v62 = vmul.f32 %v342_v57, %v342_v57  ;;  %v392_v3 = vmul.f32 %v342_v57, %v826_v21 }
 0x195   :  { %384 = vadd.xlane.f32.xlu1 %v383_v61  ;;  %v351_v0 = vpop.f32.mrf.mxu1  ;;  %v399_v4 = vsel %vm262_vm7, %v393_v63, 0.0 }
 0x196   :  { %v352_v1 = vadd.f32 %v650_v53, %v351_v0  ;;  %v380_v2 = vsel %vm262_vm7, %v376_v62, 0.0  ;;  %v379_v5 = vmul.f32 %v357_v60, %v357_v60  ;;  %v396_v6 = vsel %vm262_vm7, %v392_v3, 0.0 }
 0x197   :  { %381 = vadd.xlane.f32.xlu0 %v380_v2  ;;  %v395_v9 = vmul.f32 %v357_v60, %v830_v25 }
 0x198   :  { %v378_v7 = vmul.f32 %v352_v1, %v352_v1  ;;  %v389_v8 = vsel %vm262_vm7, %v379_v5, 0.0  ;;  %v394_v11 = vmul.f32 %v352_v1, %v837_v30 }
 0x199   :  { %400 = vadd.xlane.f32.xlu1 %v399_v4  ;;  %v405_v12 = vsel %vm262_vm7, %v395_v9, 0.0 }
 0x19a   :  { %v386_v10 = vsel %vm262_vm7, %v378_v7, 0.0  ;;  %v402_v13 = vsel %vm262_vm7, %v394_v11, 0.0 }
 0x19b   :  { %397 = vadd.xlane.f32.xlu0 %v396_v6 }
 0x19d   :  { %390 = vadd.xlane.f32.xlu1 %v389_v8 }
 0x19f   :  { %387 = vadd.xlane.f32.xlu0 %v386_v10 }
 0x1a1   :  { %406 = vadd.xlane.f32.xlu1 %v405_v12 }
 0x1a3   :  { %403 = vadd.xlane.f32.xlu0 %v402_v13 }
 0x21e   :  { %v385_v26 = vpop.xlane.xlu1 %384 }
 0x21f   :  { %v409_v28 = vmul.f32 %v385_v26, %v852_v37 }
 0x220   :  { %v382_v24 = vpop.xlane.xlu0 %381 }
 0x221   :  { %v408_v31 = vmul.f32 %v382_v24, %v855_v39  ;;  %v413_v33 = vmax.f32 %v409_v28, 1e-16 }
 0x222   :  { %v401_v29 = vpop.xlane.xlu1 %400 }
 0x223   :  { %v412_v34 = vmax.f32 %v408_v31, 1e-16  ;;  %736 = vrsqrt.f32 %v413_v33 }
 0x224   :  { %v398_v27 = vpop.xlane.xlu0 %397 }
 0x225   :  { %738 = vrsqrt.f32 %v412_v34 }
 0x226   :  { %v391_v36 = vpop.xlane.xlu1 %390 }
 0x227   :  { %v411_v38 = vmul.f32 %v391_v36, %v858_v41 }
 0x228   :  { %v388_v32 = vpop.xlane.xlu0 %387 }
 0x229   :  { %v410_v35 = vmul.f32 %v388_v32, %v861_v43  ;;  %v415_v42 = vmax.f32 %v411_v38, 1e-16 }
 0x22a   :  { %v407_v48 = vpop.xlane.xlu1 %406 }
 0x22b   :  { %v414_v40 = vmax.f32 %v410_v35, 1e-16 }
 0x22c   :  { %v404_v49 = vpop.xlane.xlu0 %403 }
 0x22d   :  { %740 = vrsqrt.f32 %v414_v40 }
 0x22e   :  { %742 = vrsqrt.f32 %v415_v42 }
 0x230   :  { %v737_v44 = vpop.eup %736 }
 0x231   :  { %v421_v37 = vmul.f32 %v737_v44, %v401_v29 }
 0x232   :  { %v718_v14 = vpop.f32.mrf.mxu0  ;;  %v739_v45 = vpop.eup %738 }
 0x233   :  { %v522_v15 = vmul.f32 2.0, %v718_v14  ;;  %v420_v46 = vmul.f32 %v739_v45, %v398_v27  ;;  %v425_v39 = vmul.f32 2.0, %v421_v37 }
 0x234   :  { %v512_v16 = vpop.f32.mrf.mxu0 }
 0x235   :  { %v521_v17 = vmul.f32 2.0, %v512_v16  ;;  %612 = vrot.lane.b32.xlu1 %v522_v15, %s745_s4  ;;  %v424_v50 = vmul.f32 2.0, %v420_v46  ;;  %v623_v41 = vsel %vm262_vm7, %v821_v18, %v425_v39 }
 0x236   :  { %v725_v19 = vpop.f32.mrf.mxu1 }
 0x237   :  { %610 = vrot.lane.b32.xlu0 %v521_v17, %s745_s4  ;;  %v605_v23 = vmul.f32 2.0, %v725_v19  ;;  %v622_v57 = vsel %vm262_vm7, %v826_v21, %v424_v50 }
 0x238   :  { %v595_v20 = vpop.f32.mrf.mxu1 }
 0x239   :  { %v604_v22 = vmul.f32 2.0, %v595_v20 }
 0x23a   :  { %v741_v47 = vpop.eup %740 }
 0x23b   :  { %614 = vrot.lane.b32.xlu1 %v604_v22, %s745_s4  ;;  %v422_v51 = vmul.f32 %v741_v47, %v404_v49  ;;  %v743_v43 = vpop.eup %742 }
 0x23c   :  { %v423_v54 = vmul.f32 %v743_v43, %v407_v48 }
 0x23d   :  { %v426_v55 = vmul.f32 2.0, %v422_v51 }
 0x23e   :  { %v427_v18 = vmul.f32 2.0, %v423_v54 }
 0x23f   :  { %616 = vrot.lane.b32.xlu1 %v605_v23, %s745_s4  ;;  %v624_v62 = vsel %vm262_vm7, %v837_v30, %v426_v55 }
 0x240   :  { %v625_v0 = vsel %vm262_vm7, %v830_v25, %v427_v18 }
 0x2a7   :  { %v613_v52 = vpop.permute.xlu1 %612 }
 0x2a8   :  { %v628_v53 = vsel %vm626_vm10, %v623_v41, %v613_v52 }
 0x2a9   :  { %v633_v56 = vsel %vm631_vm11, %v628_v53, 0.0  ;;  %v611_v58 = vpop.permute.xlu0 %610 }
 0x2aa   :  { %637 = vst [vmem:[%s933_s6 + $0x8] sm:$0xff] %v633_v56  ;;  %v627_v59 = vsel %vm626_vm10, %v622_v57, %v611_v58 }
 0x2ab   :  { %v632_v60 = vsel %vm631_vm11, %v627_v59, 0.0 }
 0x2ac   :  { %636 = vst [vmem:[%s933_s6] sm:$0xff] %v632_v60 }
 0x2ad   :  { %v615_v61 = vpop.permute.xlu1 %614 }
 0x2ae   :  { %v629_v21 = vsel %vm626_vm10, %v624_v62, %v615_v61 }
 0x2af   :  { %v634_v63 = vsel %vm631_vm11, %v629_v21, 0.0 }
 0x2b0   :  { %638 = vst [vmem:[%s933_s6 + $0x10] sm:$0xff] %v634_v63 }
 0x2b1   :  { %v617_v1 = vpop.permute.xlu1 %616 }
 0x2b2   :  { %v630_v2 = vsel %vm626_vm10, %v625_v0, %v617_v1 }
 0x2b3   :  { %v635_v3 = vsel %vm631_vm11, %v630_v2, 0.0 }
 0x2b4   :  { %639 = vst [vmem:[%s933_s6 + $0x18] sm:$0xff] %v635_v3 }

</bundles_post_ra>
